<compile_context>
chip_gen: v7x
topology: tpu7x:2x2x1
jax: 0.10.0
libtpu: 0.0.40
codegen_flags: <defaults>
</compile_context>

<pallas_src>
import jax
import jax.numpy as jnp
from jax.experimental import pallas as pl
from jax.experimental.pallas import tpu as pltpu

NUM_HEADS = 8  # nn.MultiheadAttention(num_heads=8)


def _erf(x):
    # Abramowitz & Stegun 7.1.26 rational approximation (|abs err| < ~1.5e-7).
    # Division replaced by an EUP approximate reciprocal (separate VLIW slot).
    p = 0.3275911
    a1, a2, a3, a4, a5 = (0.254829592, -0.284496736, 1.421413741,
                          -1.453152027, 1.061405429)
    sgn = jnp.where(x >= 0.0, 1.0, -1.0)
    ax = jnp.abs(x)
    t = pl.reciprocal(1.0 + p * ax, approx=True)
    poly = ((((a5 * t + a4) * t + a3) * t + a2) * t + a1) * t
    return sgn * (1.0 - poly * jnp.exp(-ax * ax))


def _gelu_exact(x):
    # nn.GELU() default (approximate='none'): 0.5 * x * (1 + erf(x / sqrt(2)))
    return 0.5 * x * (1.0 + _erf(x * 0.7071067811865476))


def _classifier_kernel(xin_ref, wf_ref, wa_ref, w1_ref, w2_ref, vec_ref, out_ref):
    f32 = jnp.float32
    H = wa_ref.shape[0]
    H4 = w1_ref.shape[1]
    H16 = w2_ref.shape[1]

    # ---- fused x_mlp / pro_mlp: [x | pro | 1] @ blockdiag(Wx', Wp') -> ReLU ----
    # (Linear bias + eval-mode BatchNorm already folded into wf_ref in the wrapper.)
    feat = jnp.dot(xin_ref[...], wf_ref[...], preferred_element_type=f32)
    feat = jnp.maximum(feat, 0.0)            # ReLU for both branches; Dropout = identity
    x_feat = feat[:, :H]
    p_feat = feat[:, H:]

    # ---- MultiheadAttention(query=x_feat[:,None], key=value=pro_feat[:,None]) ----
    # Both sequences have length 1, so the per-head softmax over the single key is
    # exactly 1 and the q/k projections cancel: attn_out = out_proj(v_proj(p_feat)).
    # The v-proj and out-proj matrices are pre-fused into wa_ref / vec_ref[0].
    attn_out = jnp.dot(p_feat.astype(wa_ref.dtype), wa_ref[...],
                       preferred_element_type=f32) + vec_ref[0:1, :]

    fused = x_feat + attn_out

    # ---- classifier: LayerNorm -> Linear -> GELU -> Linear -> GELU -> Linear ----
    mean = jnp.mean(fused, axis=-1, keepdims=True)
    centered = fused - mean
    var = jnp.mean(centered * centered, axis=-1, keepdims=True)
    normed = centered * jax.lax.rsqrt(var + 1e-5)
    normed = normed * vec_ref[1:2, :] + vec_ref[2:3, :]

    h1 = jnp.dot(normed.astype(w1_ref.dtype), w1_ref[...], preferred_element_type=f32)
    h1 = _gelu_exact(h1 + vec_ref[3:4, :H4])
    h2 = jnp.dot(h1.astype(w2_ref.dtype), w2_ref[...], preferred_element_type=f32)
    h2 = _gelu_exact(h2 + vec_ref[4:5, :H16])

    # Final Linear(H//16 -> 1) as broadcast-multiply + lane reduction
    logits = jnp.sum(h2 * vec_ref[5:6, :H16], axis=-1, keepdims=True) + vec_ref[6:7, 0:1]
    out_ref[...] = logits


def init_params(key, x_dim, pro_dim, hidden_dim):
    ks = jax.random.split(key, 8)
    H = hidden_dim

    def kaiming_normal(k, out_f, in_f):
        # nn.init.kaiming_normal_(nonlinearity='relu'): std = sqrt(2 / fan_in)
        return jax.random.normal(k, (out_f, in_f), jnp.float32) * jnp.sqrt(2.0 / in_f)

    xav = jnp.sqrt(6.0 / (4.0 * H))  # xavier_uniform bound for (3H, H) in_proj
    params = {
        # x_mlp / pro_mlp Linear layers (Kaiming normal, bias = 0.1)
        "x_w": kaiming_normal(ks[0], H, x_dim),
        "x_b": jnp.full((H,), 0.1, jnp.float32),
        "p_w": kaiming_normal(ks[1], H, pro_dim),
        "p_b": jnp.full((H,), 0.1, jnp.float32),
        # BatchNorm1d defaults: gamma=1, beta=0, running_mean=0, running_var=1
        "x_bn_g": jnp.ones((H,), jnp.float32), "x_bn_b": jnp.zeros((H,), jnp.float32),
        "x_bn_m": jnp.zeros((H,), jnp.float32), "x_bn_v": jnp.ones((H,), jnp.float32),
        "p_bn_g": jnp.ones((H,), jnp.float32), "p_bn_b": jnp.zeros((H,), jnp.float32),
        "p_bn_m": jnp.zeros((H,), jnp.float32), "p_bn_v": jnp.ones((H,), jnp.float32),
        # MultiheadAttention: packed in_proj (rows [0:H]=q, [H:2H]=k, [2H:3H]=v)
        "in_proj_w": jax.random.uniform(ks[2], (3 * H, H), jnp.float32, -xav, xav),
        "in_proj_b": jnp.zeros((3 * H,), jnp.float32),
        "out_w": jax.random.uniform(ks[3], (H, H), jnp.float32,
                                    -jnp.sqrt(1.0 / H), jnp.sqrt(1.0 / H)),
        "out_b": jnp.zeros((H,), jnp.float32),
        # classifier: LayerNorm + 3 Linears (Kaiming normal, bias = 0.1)
        "ln_g": jnp.ones((H,), jnp.float32), "ln_b": jnp.zeros((H,), jnp.float32),
        "c1_w": kaiming_normal(ks[4], H // 4, H),
        "c1_b": jnp.full((H // 4,), 0.1, jnp.float32),
        "c2_w": kaiming_normal(ks[5], H // 16, H // 4),
        "c2_b": jnp.full((H // 16,), 0.1, jnp.float32),
        "c3_w": kaiming_normal(ks[6], 1, H // 16),
        "c3_b": jnp.full((1,), 0.1, jnp.float32),
    }
    return params


def _round_up(n, m):
    return ((n + m - 1) // m) * m


def cross_attention_classifier(params, x_embed, pro_embed):
    f32, bf16 = jnp.float32, jnp.bfloat16
    B, x_dim = x_embed.shape
    pro_dim = pro_embed.shape[1]
    H = params["x_w"].shape[0]
    H4, H16 = H // 4, H // 16

    def fold_bn(g, b, m, v, eps=1e-5):
        scale = g / jnp.sqrt(v + eps)
        shift = b - m * scale
        return scale, shift

    xs, xt = fold_bn(params["x_bn_g"], params["x_bn_b"], params["x_bn_m"], params["x_bn_v"])
    ps, pt = fold_bn(params["p_bn_g"], params["p_bn_b"], params["p_bn_m"], params["p_bn_v"])

    # Fold eval-mode BatchNorm into the Linear weights/biases.
    wx = params["x_w"].T * xs[None, :]          # (x_dim, H)
    bx = params["x_b"] * xs + xt                # (H,)
    wp = params["p_w"].T * ps[None, :]          # (pro_dim, H)
    bp = params["p_b"] * ps + pt                # (H,)

    # One block-diagonal front-end weight; biases ride in the last ("ones") row.
    Din = x_dim + pro_dim
    w_front = jnp.zeros((Din + 1, 2 * H), f32)
    w_front = w_front.at[:x_dim, :H].set(wx)
    w_front = w_front.at[x_dim:Din, H:].set(wp)
    w_front = w_front.at[Din, :H].set(bx)
    w_front = w_front.at[Din, H:].set(bp)

    # Attention (seq len 1): fuse value-proj and out-proj into one HxH matrix.
    wv = params["in_proj_w"][2 * H:3 * H]       # (H, H)
    bv = params["in_proj_b"][2 * H:3 * H]       # (H,)
    w_attn = wv.T @ params["out_w"].T           # (H, H)
    b_attn = bv @ params["out_w"].T + params["out_b"]

    w1 = params["c1_w"].T                       # (H, H4)
    w2 = params["c2_w"].T                       # (H4, H16)

    # Pack all remaining per-feature vectors into a single (7, H) VMEM input.
    pad_h = lambda v: jnp.pad(jnp.asarray(v, f32), (0, H - v.shape[0]))
    vecs = jnp.stack([
        b_attn.astype(f32),          # row 0: fused attention bias
        params["ln_g"],              # row 1: LayerNorm gain
        params["ln_b"],              # row 2: LayerNorm bias
        pad_h(params["c1_b"]),       # row 3: classifier Linear1 bias
        pad_h(params["c2_b"]),       # row 4: classifier Linear2 bias
        pad_h(params["c3_w"][0]),    # row 5: final Linear weight (as a row)
        pad_h(params["c3_b"]),       # row 6: final Linear bias
    ], axis=0)

    # Concatenate inputs + ones column (carries the folded biases).
    xin = jnp.concatenate(
        [x_embed.astype(f32), pro_embed.astype(f32), jnp.ones((B, 1), f32)], axis=1)

    # Batch tile: multiple of 8 sublanes, <=512 rows, pad B if needed.
    TB = min(512, _round_up(B, 8))
    B_pad = _round_up(B, TB)
    if B_pad != B:
        xin = jnp.pad(xin, ((0, B_pad - B), (0, 0)))
    xin = xin.astype(bf16)           # bf16 MXU operands, f32 accumulation in-kernel

    Din1 = Din + 1
    grid_spec = pltpu.PrefetchScalarGridSpec(
        num_scalar_prefetch=0,
        grid=(B_pad // TB,),
        in_specs=[
            pl.BlockSpec((TB, Din1), lambda i: (i, 0)),      # activations: tiled over batch
            pl.BlockSpec((Din1, 2 * H), lambda i: (0, 0)),   # weights stay VMEM-resident
            pl.BlockSpec((H, H), lambda i: (0, 0)),
            pl.BlockSpec((H, H4), lambda i: (0, 0)),
            pl.BlockSpec((H4, H16), lambda i: (0, 0)),
            pl.BlockSpec((7, H), lambda i: (0, 0)),
        ],
        out_specs=pl.BlockSpec((TB, 1), lambda i: (i, 0)),
    )

    logits = pl.pallas_call(
        _classifier_kernel,
        out_shape=jax.ShapeDtypeStruct((B_pad, 1), f32),
        grid_spec=grid_spec,
        compiler_params=pltpu.CompilerParams(
            dimension_semantics=("parallel",)),   # v7x: shard batch grid across 2 TCs
    )(xin, w_front.astype(bf16), w_attn.astype(bf16),
      w1.astype(bf16), w2.astype(bf16), vecs)

    return logits[:B, 0]  # .squeeze(-1)


if __name__ == "__main__":
    B, X_DIM, PRO_DIM, HIDDEN = 8, 48, 40, 32  # HIDDEN divisible by num_heads=8
    key = jax.random.PRNGKey(0)
    kx, kp, kparams = jax.random.split(key, 3)
    x_embed = jax.random.normal(kx, (B, X_DIM), jnp.float32)
    pro_embed = jax.random.normal(kp, (B, PRO_DIM), jnp.float32)

    params = init_params(kparams, X_DIM, PRO_DIM, HIDDEN)
    logits = cross_attention_classifier(params, x_embed, pro_embed)
    jax.block_until_ready(logits)
    assert logits.shape == (B,) and logits.dtype == jnp.float32
    print("KERNEL_OK")
</pallas_src>

<mosaic_0001>
module attributes {stable_mosaic.version = 11 : i64} {
  func.func @_classifier_kernel(%arg0: i32, %arg1: memref<8x89xbf16, #tpu.memory_space<vmem>>, %arg2: memref<89x64xbf16, #tpu.memory_space<vmem>>, %arg3: memref<32x32xbf16, #tpu.memory_space<vmem>>, %arg4: memref<32x8xbf16, #tpu.memory_space<vmem>>, %arg5: memref<8x2xbf16, #tpu.memory_space<vmem>>, %arg6: memref<7x32xf32, #tpu.memory_space<vmem>>, %arg7: memref<8x1xf32, #tpu.memory_space<vmem>>) attributes {dimension_semantics = [#tpu.dimension_semantics<parallel>], iteration_bounds = array<i64: 1>, scalar_prefetch = 0 : i64, scratch_operands = 0 : i64, tpu.core_type = #tpu.core_type<tc>, window_params = [{transform_indices = @transform_0, window_bounds = array<i64: 8, 89>}, {pipeline_mode = #tpu.pipeline_mode<synchronous>, transform_indices = @transform_1, window_bounds = array<i64: 89, 64>}, {pipeline_mode = #tpu.pipeline_mode<synchronous>, transform_indices = @transform_2, window_bounds = array<i64: 32, 32>}, {pipeline_mode = #tpu.pipeline_mode<synchronous>, transform_indices = @transform_3, window_bounds = array<i64: 32, 8>}, {pipeline_mode = #tpu.pipeline_mode<synchronous>, transform_indices = @transform_4, window_bounds = array<i64: 8, 2>}, {pipeline_mode = #tpu.pipeline_mode<synchronous>, transform_indices = @transform_5, window_bounds = array<i64: 7, 32>}, {transform_indices = @transform_6, window_bounds = array<i64: 8, 1>}]} {
    %c0 = arith.constant 0 : index
    %c0_0 = arith.constant 0 : index
    %0 = vector.load %arg1[%c0, %c0_0] : memref<8x89xbf16, #tpu.memory_space<vmem>>, vector<8x89xbf16>
    %c0_1 = arith.constant 0 : index
    %c0_2 = arith.constant 0 : index
    %1 = vector.load %arg2[%c0_1, %c0_2] : memref<89x64xbf16, #tpu.memory_space<vmem>>, vector<89x64xbf16>
    %cst = arith.constant dense<0.000000e+00> : vector<8x64xf32>
    %2 = tpu.matmul %0, %1, %cst {dimension_numbers = #tpu.dot_dimension_numbers<[1], [0], [0], [1], [0, 0, 1, 1], [], []>} : vector<8x89xbf16>, vector<89x64xbf16>, vector<8x64xf32> -> vector<8x64xf32>
    %cst_3 = arith.constant 0.000000e+00 : f32
    %3 = vector.broadcast %cst_3 : f32 to vector<8x64xf32>
    %4 = arith.maximumf %2, %3 : vector<8x64xf32>
    %5 = vector.extract_strided_slice %4 {offsets = [0, 0], sizes = [8, 32], strides = [1, 1]} : vector<8x64xf32> to vector<8x32xf32>
    %6 = vector.extract_strided_slice %4 {offsets = [0, 32], sizes = [8, 32], strides = [1, 1]} : vector<8x64xf32> to vector<8x32xf32>
    %7 = arith.truncf %6 : vector<8x32xf32> to vector<8x32xbf16>
    %c0_4 = arith.constant 0 : index
    %c0_5 = arith.constant 0 : index
    %8 = vector.load %arg3[%c0_4, %c0_5] : memref<32x32xbf16, #tpu.memory_space<vmem>>, vector<32x32xbf16>
    %cst_6 = arith.constant dense<0.000000e+00> : vector<8x32xf32>
    %9 = tpu.matmul %7, %8, %cst_6 {dimension_numbers = #tpu.dot_dimension_numbers<[1], [0], [0], [1], [0, 0, 1, 1], [], []>} : vector<8x32xbf16>, vector<32x32xbf16>, vector<8x32xf32> -> vector<8x32xf32>
    %c0_7 = arith.constant 0 : index
    %c0_8 = arith.constant 0 : index
    %10 = vector.load %arg6[%c0_7, %c0_8] : memref<7x32xf32, #tpu.memory_space<vmem>>, vector<1x32xf32>
    %11 = vector.broadcast %10 : vector<1x32xf32> to vector<8x32xf32>
    %12 = arith.addf %9, %11 : vector<8x32xf32>
    %13 = arith.addf %5, %12 : vector<8x32xf32>
    %cst_9 = arith.constant dense<0.000000e+00> : vector<8xf32>
    %14 = vector.multi_reduction <add>, %13, %cst_9 [1] : vector<8x32xf32> to vector<8xf32>
    %15 = vector.shape_cast %14 : vector<8xf32> to vector<8x1xf32>
    %cst_10 = arith.constant 3.200000e+01 : f32
    %16 = vector.broadcast %cst_10 : f32 to vector<8x1xf32>
    %17 = arith.divf %15, %16 : vector<8x1xf32>
    %18 = vector.broadcast %17 : vector<8x1xf32> to vector<8x32xf32>
    %19 = arith.subf %13, %18 : vector<8x32xf32>
    %20 = arith.mulf %19, %19 : vector<8x32xf32>
    %cst_11 = arith.constant dense<0.000000e+00> : vector<8xf32>
    %21 = vector.multi_reduction <add>, %20, %cst_11 [1] : vector<8x32xf32> to vector<8xf32>
    %22 = vector.shape_cast %21 : vector<8xf32> to vector<8x1xf32>
    %cst_12 = arith.constant 3.200000e+01 : f32
    %23 = vector.broadcast %cst_12 : f32 to vector<8x1xf32>
    %24 = arith.divf %22, %23 : vector<8x1xf32>
    %cst_13 = arith.constant 9.99999974E-6 : f32
    %25 = vector.broadcast %cst_13 : f32 to vector<8x1xf32>
    %26 = arith.addf %24, %25 : vector<8x1xf32>
    %27 = math.rsqrt %26 : vector<8x1xf32>
    %28 = vector.broadcast %27 : vector<8x1xf32> to vector<8x32xf32>
    %29 = arith.mulf %19, %28 : vector<8x32xf32>
    %c1 = arith.constant 1 : index
    %c0_14 = arith.constant 0 : index
    %30 = vector.load %arg6[%c1, %c0_14] : memref<7x32xf32, #tpu.memory_space<vmem>>, vector<1x32xf32>
    %31 = vector.broadcast %30 : vector<1x32xf32> to vector<8x32xf32>
    %32 = arith.mulf %29, %31 : vector<8x32xf32>
    %c2 = arith.constant 2 : index
    %c0_15 = arith.constant 0 : index
    %33 = vector.load %arg6[%c2, %c0_15] : memref<7x32xf32, #tpu.memory_space<vmem>>, vector<1x32xf32>
    %34 = vector.broadcast %33 : vector<1x32xf32> to vector<8x32xf32>
    %35 = arith.addf %32, %34 : vector<8x32xf32>
    %36 = arith.truncf %35 : vector<8x32xf32> to vector<8x32xbf16>
    %c0_16 = arith.constant 0 : index
    %c0_17 = arith.constant 0 : index
    %37 = vector.load %arg4[%c0_16, %c0_17] : memref<32x8xbf16, #tpu.memory_space<vmem>>, vector<32x8xbf16>
    %cst_18 = arith.constant dense<0.000000e+00> : vector<8x8xf32>
    %38 = tpu.matmul %36, %37, %cst_18 {dimension_numbers = #tpu.dot_dimension_numbers<[1], [0], [0], [1], [0, 0, 1, 1], [], []>} : vector<8x32xbf16>, vector<32x8xbf16>, vector<8x8xf32> -> vector<8x8xf32>
    %c3 = arith.constant 3 : index
    %c0_19 = arith.constant 0 : index
    %39 = vector.load %arg6[%c3, %c0_19] : memref<7x32xf32, #tpu.memory_space<vmem>>, vector<1x8xf32>
    %40 = vector.broadcast %39 : vector<1x8xf32> to vector<8x8xf32>
    %41 = arith.addf %38, %40 : vector<8x8xf32>
    %cst_20 = arith.constant 5.000000e-01 : f32
    %42 = vector.broadcast %cst_20 : f32 to vector<8x8xf32>
    %43 = arith.mulf %42, %41 : vector<8x8xf32>
    %cst_21 = arith.constant 0.707106769 : f32
    %44 = vector.broadcast %cst_21 : f32 to vector<8x8xf32>
    %45 = arith.mulf %41, %44 : vector<8x8xf32>
    %cst_22 = arith.constant 0.000000e+00 : f32
    %46 = vector.broadcast %cst_22 : f32 to vector<8x8xf32>
    %47 = arith.cmpf oge, %45, %46 : vector<8x8xf32>
    %cst_23 = arith.constant 1.000000e+00 : f32
    %cst_24 = arith.constant -1.000000e+00 : f32
    %48 = vector.broadcast %cst_23 : f32 to vector<8x8xf32>
    %49 = vector.broadcast %cst_24 : f32 to vector<8x8xf32>
    %50 = arith.select %47, %48, %49 : vector<8x8xi1>, vector<8x8xf32>
    %51 = math.absf %45 : vector<8x8xf32>
    %cst_25 = arith.constant 0.327591091 : f32
    %52 = vector.broadcast %cst_25 : f32 to vector<8x8xf32>
    %53 = arith.mulf %52, %51 : vector<8x8xf32>
    %cst_26 = arith.constant 1.000000e+00 : f32
    %54 = vector.broadcast %cst_26 : f32 to vector<8x8xf32>
    %55 = arith.addf %54, %53 : vector<8x8xf32>
    %56 = tpu.reciprocal %55 {approx = true} : vector<8x8xf32> -> vector<8x8xf32>
    %cst_27 = arith.constant 1.06140542 : f32
    %57 = vector.broadcast %cst_27 : f32 to vector<8x8xf32>
    %58 = arith.mulf %57, %56 : vector<8x8xf32>
    %cst_28 = arith.constant -1.45315206 : f32
    %59 = vector.broadcast %cst_28 : f32 to vector<8x8xf32>
    %60 = arith.addf %58, %59 : vector<8x8xf32>
    %61 = arith.mulf %60, %56 : vector<8x8xf32>
    %cst_29 = arith.constant 1.42141378 : f32
    %62 = vector.broadcast %cst_29 : f32 to vector<8x8xf32>
    %63 = arith.addf %61, %62 : vector<8x8xf32>
    %64 = arith.mulf %63, %56 : vector<8x8xf32>
    %cst_30 = arith.constant -0.284496725 : f32
    %65 = vector.broadcast %cst_30 : f32 to vector<8x8xf32>
    %66 = arith.addf %64, %65 : vector<8x8xf32>
    %67 = arith.mulf %66, %56 : vector<8x8xf32>
    %cst_31 = arith.constant 0.254829586 : f32
    %68 = vector.broadcast %cst_31 : f32 to vector<8x8xf32>
    %69 = arith.addf %67, %68 : vector<8x8xf32>
    %70 = arith.mulf %69, %56 : vector<8x8xf32>
    %cst_32 = arith.constant 0.000000e+00 : f32
    %71 = vector.broadcast %cst_32 : f32 to vector<8x8xf32>
    %72 = arith.subf %71, %51 : vector<8x8xf32>
    %73 = arith.mulf %72, %51 : vector<8x8xf32>
    %74 = math.exp %73 : vector<8x8xf32>
    %75 = arith.mulf %70, %74 : vector<8x8xf32>
    %cst_33 = arith.constant 1.000000e+00 : f32
    %76 = vector.broadcast %cst_33 : f32 to vector<8x8xf32>
    %77 = arith.subf %76, %75 : vector<8x8xf32>
    %78 = arith.mulf %50, %77 : vector<8x8xf32>
    %cst_34 = arith.constant 1.000000e+00 : f32
    %79 = vector.broadcast %cst_34 : f32 to vector<8x8xf32>
    %80 = arith.addf %79, %78 : vector<8x8xf32>
    %81 = arith.mulf %43, %80 : vector<8x8xf32>
    %82 = arith.truncf %81 : vector<8x8xf32> to vector<8x8xbf16>
    %c0_35 = arith.constant 0 : index
    %c0_36 = arith.constant 0 : index
    %83 = vector.load %arg5[%c0_35, %c0_36] : memref<8x2xbf16, #tpu.memory_space<vmem>>, vector<8x2xbf16>
    %cst_37 = arith.constant dense<0.000000e+00> : vector<8x2xf32>
    %84 = tpu.matmul %82, %83, %cst_37 {dimension_numbers = #tpu.dot_dimension_numbers<[1], [0], [0], [1], [0, 0, 1, 1], [], []>} : vector<8x8xbf16>, vector<8x2xbf16>, vector<8x2xf32> -> vector<8x2xf32>
    %c4 = arith.constant 4 : index
    %c0_38 = arith.constant 0 : index
    %85 = vector.load %arg6[%c4, %c0_38] : memref<7x32xf32, #tpu.memory_space<vmem>>, vector<1x2xf32>
    %86 = vector.broadcast %85 : vector<1x2xf32> to vector<8x2xf32>
    %87 = arith.addf %84, %86 : vector<8x2xf32>
    %cst_39 = arith.constant 5.000000e-01 : f32
    %88 = vector.broadcast %cst_39 : f32 to vector<8x2xf32>
    %89 = arith.mulf %88, %87 : vector<8x2xf32>
    %cst_40 = arith.constant 0.707106769 : f32
    %90 = vector.broadcast %cst_40 : f32 to vector<8x2xf32>
    %91 = arith.mulf %87, %90 : vector<8x2xf32>
    %cst_41 = arith.constant 0.000000e+00 : f32
    %92 = vector.broadcast %cst_41 : f32 to vector<8x2xf32>
    %93 = arith.cmpf oge, %91, %92 : vector<8x2xf32>
    %cst_42 = arith.constant 1.000000e+00 : f32
    %cst_43 = arith.constant -1.000000e+00 : f32
    %94 = vector.broadcast %cst_42 : f32 to vector<8x2xf32>
    %95 = vector.broadcast %cst_43 : f32 to vector<8x2xf32>
    %96 = arith.select %93, %94, %95 : vector<8x2xi1>, vector<8x2xf32>
    %97 = math.absf %91 : vector<8x2xf32>
    %cst_44 = arith.constant 0.327591091 : f32
    %98 = vector.broadcast %cst_44 : f32 to vector<8x2xf32>
    %99 = arith.mulf %98, %97 : vector<8x2xf32>
    %cst_45 = arith.constant 1.000000e+00 : f32
    %100 = vector.broadcast %cst_45 : f32 to vector<8x2xf32>
    %101 = arith.addf %100, %99 : vector<8x2xf32>
    %102 = tpu.reciprocal %101 {approx = true} : vector<8x2xf32> -> vector<8x2xf32>
    %cst_46 = arith.constant 1.06140542 : f32
    %103 = vector.broadcast %cst_46 : f32 to vector<8x2xf32>
    %104 = arith.mulf %103, %102 : vector<8x2xf32>
    %cst_47 = arith.constant -1.45315206 : f32
    %105 = vector.broadcast %cst_47 : f32 to vector<8x2xf32>
    %106 = arith.addf %104, %105 : vector<8x2xf32>
    %107 = arith.mulf %106, %102 : vector<8x2xf32>
    %cst_48 = arith.constant 1.42141378 : f32
    %108 = vector.broadcast %cst_48 : f32 to vector<8x2xf32>
    %109 = arith.addf %107, %108 : vector<8x2xf32>
    %110 = arith.mulf %109, %102 : vector<8x2xf32>
    %cst_49 = arith.constant -0.284496725 : f32
    %111 = vector.broadcast %cst_49 : f32 to vector<8x2xf32>
    %112 = arith.addf %110, %111 : vector<8x2xf32>
    %113 = arith.mulf %112, %102 : vector<8x2xf32>
    %cst_50 = arith.constant 0.254829586 : f32
    %114 = vector.broadcast %cst_50 : f32 to vector<8x2xf32>
    %115 = arith.addf %113, %114 : vector<8x2xf32>
    %116 = arith.mulf %115, %102 : vector<8x2xf32>
    %cst_51 = arith.constant 0.000000e+00 : f32
    %117 = vector.broadcast %cst_51 : f32 to vector<8x2xf32>
    %118 = arith.subf %117, %97 : vector<8x2xf32>
    %119 = arith.mulf %118, %97 : vector<8x2xf32>
    %120 = math.exp %119 : vector<8x2xf32>
    %121 = arith.mulf %116, %120 : vector<8x2xf32>
    %cst_52 = arith.constant 1.000000e+00 : f32
    %122 = vector.broadcast %cst_52 : f32 to vector<8x2xf32>
    %123 = arith.subf %122, %121 : vector<8x2xf32>
    %124 = arith.mulf %96, %123 : vector<8x2xf32>
    %cst_53 = arith.constant 1.000000e+00 : f32
    %125 = vector.broadcast %cst_53 : f32 to vector<8x2xf32>
    %126 = arith.addf %125, %124 : vector<8x2xf32>
    %127 = arith.mulf %89, %126 : vector<8x2xf32>
    %c5 = arith.constant 5 : index
    %c0_54 = arith.constant 0 : index
    %128 = vector.load %arg6[%c5, %c0_54] : memref<7x32xf32, #tpu.memory_space<vmem>>, vector<1x2xf32>
    %129 = vector.broadcast %128 : vector<1x2xf32> to vector<8x2xf32>
    %130 = arith.mulf %127, %129 : vector<8x2xf32>
    %cst_55 = arith.constant dense<0.000000e+00> : vector<8xf32>
    %131 = vector.multi_reduction <add>, %130, %cst_55 [1] : vector<8x2xf32> to vector<8xf32>
    %132 = vector.shape_cast %131 : vector<8xf32> to vector<8x1xf32>
    %c6 = arith.constant 6 : index
    %c0_56 = arith.constant 0 : index
    %133 = vector.load %arg6[%c6, %c0_56] : memref<7x32xf32, #tpu.memory_space<vmem>>, vector<1x1xf32>
    %134 = vector.broadcast %133 : vector<1x1xf32> to vector<8x1xf32>
    %135 = arith.addf %132, %134 : vector<8x1xf32>
    %c0_57 = arith.constant 0 : index
    %c0_58 = arith.constant 0 : index
    %136 = vector.load %arg7[%c0_57, %c0_58] : memref<8x1xf32, #tpu.memory_space<vmem>>, vector<8x1xf32>
    tpu.vector_store %arg7[%c0_57, %c0_58], %135 {strides = array<i32>} : memref<8x1xf32, #tpu.memory_space<vmem>>, vector<8x1xf32>,
    return
  }
  func.func @transform_0(%arg0: i32) -> (i32, i32) {
    %c0_i32 = arith.constant 0 : i32
    %c0_i32_0 = arith.constant 0 : i32
    return %arg0, %c0_i32 : i32, i32
  }
  func.func @transform_1(%arg0: i32) -> (i32, i32) {
    %c0_i32 = arith.constant 0 : i32
    %c0_i32_0 = arith.constant 0 : i32
    %c0_i32_1 = arith.constant 0 : i32
    return %c0_i32, %c0_i32_0 : i32, i32
  }
  func.func @transform_2(%arg0: i32) -> (i32, i32) {
    %c0_i32 = arith.constant 0 : i32
    %c0_i32_0 = arith.constant 0 : i32
    %c0_i32_1 = arith.constant 0 : i32
    return %c0_i32, %c0_i32_0 : i32, i32
  }
  func.func @transform_3(%arg0: i32) -> (i32, i32) {
    %c0_i32 = arith.constant 0 : i32
    %c0_i32_0 = arith.constant 0 : i32
    %c0_i32_1 = arith.constant 0 : i32
    return %c0_i32, %c0_i32_0 : i32, i32
  }
  func.func @transform_4(%arg0: i32) -> (i32, i32) {
    %c0_i32 = arith.constant 0 : i32
    %c0_i32_0 = arith.constant 0 : i32
    %c0_i32_1 = arith.constant 0 : i32
    return %c0_i32, %c0_i32_0 : i32, i32
  }
  func.func @transform_5(%arg0: i32) -> (i32, i32) {
    %c0_i32 = arith.constant 0 : i32
    %c0_i32_0 = arith.constant 0 : i32
    %c0_i32_1 = arith.constant 0 : i32
    return %c0_i32, %c0_i32_0 : i32, i32
  }
  func.func @transform_6(%arg0: i32) -> (i32, i32) {
    %c0_i32 = arith.constant 0 : i32
    %c0_i32_0 = arith.constant 0 : i32
    return %arg0, %c0_i32 : i32, i32
  }
}

</mosaic_0001>

<bundles_post_ra>
// kernel: tpu_custom_call.1
= control target key start
LH: loop header
LB: loop body
LE: loop exit
PB: predicated region body
PF: predicated region fallthrough
CT: control target
= control target key end

     0   :  { %v512_v0 = vmov 0.0   ;;  %vm513_vm0 = vmmov 0   ;;  %vm76_vm1 = vcmask 1043456   ;;  %vm77_vm2 = vcmask 1044480   ;;  %s637_s1 = inlined_call_operand.vmem [shape: bf16[89,64], index: 1, kind: input, shape index: {}]   ;;  %s638_s0 = inlined_call_operand.vmem [shape: bf16[8,89], index: 0, kind: input, shape index: {}]   ;;  %s639_s2 = inlined_call_operand.vmem [shape: bf16[32,32], index: 2, kind: input, shape index: {}]   ;;  %s640_s5 = inlined_call_operand.vmem [shape: f32[7,32], index: 5, kind: input, shape index: {}]   ;;  %s641_s3 = inlined_call_operand.vmem [shape: bf16[32,8], index: 3, kind: input, shape index: {}]   ;;  %s642_s4 = inlined_call_operand.vmem [shape: bf16[8,2], index: 4, kind: input, shape index: {}]   ;;  %s643_s6 = inlined_call_operand.vmem [shape: f32[8,1], index: 6, kind: output, shape index: {}]  }
   0x1   :  { %449 = vmatprep.subr.bf16.mxu0 %v512_v0  ;;  %v492_v1 = vld [vmem:[%s637_s1] sm:$0xff]   ;;  %465 = vmatprep.subr.bf16.mxu1 %v512_v0  ;;  %v493_v2 = vld [vmem:[%s637_s1 + $0x8] sm:$0xff]   ;;  %v494_v3 = vld [vmem:[%s637_s1 + $0x10] sm:$0xff]   ;;  %v514_v5 = vmov 65535   ;;  %vm72_vm3 = vcmask 728064   ;;  %vm149_vm4 = vcmask 261120  }
   0x2   :  { %450 = vmatpush3.bf16.msra.mxu0 %v492_v1  ;;  %461 = vmatprep.mubr.msk.bf16.mxu0 %vm513_vm0, %v512_v0  ;;  %v495_v4 = vld [vmem:[%s637_s1 + $0x18] sm:$0xff]   ;;  %v78_v6 = vsel %vm76_vm1, 4294967295, %v514_v5  ;;  %v496_v7 = vld [vmem:[%s637_s1 + $0x20] sm:$0xff]   ;;  %v497_v8 = vld [vmem:[%s637_s1 + $0x28] sm:$0x1f]   ;;  %vm318_vm6 = vcmask 64512  }
   0x3   :  { %451 = vmatprep.subr.bf16.mxu0 %v512_v0  ;;  %469 = vmatprep.mubr.msk.bf16.mxu1 %vm513_vm0, %v512_v0  ;;  %v79_v9 = vsel %vm77_vm2, %v78_v6, 0  ;;  %v24_v11 = vld [vmem:[%s638_s0] sm:$0xf]  ;;  %v499_v13 = vld [vmem:[%s639_s2 + $0x8] sm:$0xff]   ;;  %s515_s0 = smov 96   ;;  %vm397_vm8 = vcmask 15360  }
   0x4   :  { %v81_v10 = vand.u32 %v497_v8, %v79_v9  ;;  %v498_v12 = vld [vmem:[%s639_s2] sm:$0xff]   ;;  %v501_v35 = vld [vmem:[%s641_s3 + $0x8] sm:$0xff]   ;;  %vm407_vm9 = vcmask 7168  }
   0x5   :  { %466 = vmatpush3.bf16.msra.mxu1 %v498_v12  ;;  %v420_v21 = vld [vmem:[%s640_s5] ss:$0 sm:$0xff]  ;;  %v424_v40 = vld [vmem:[%s640_s5 + $0x1] ss:$0 sm:$0xff]  ;;  %v425_v42 = vld [vmem:[%s640_s5 + $0x2] ss:$0 sm:$0xff] }
   0x6   :  { %452 = vmatpush3.bf16.msra.mxu0 %v493_v2  ;;  %467 = vmatprep.subr.bf16.mxu1 %v512_v0  ;;  %v500_v34 = vld [vmem:[%s641_s3] sm:$0xff]  }
   0x7   :  { %453 = vmatprep.subr.bf16.mxu0 %v512_v0  ;;  %v312_v46 = vld [vmem:[%s642_s4] sm:$0xf] }
   0x8   :  { %v323_v47 = vsel %vm76_vm1, %v312_v46, 0  ;;  %v426_v48 = vld [vmem:[%s640_s5 + $0x3] ss:$0 sm:$0xff] }
   0x9   :  { %468 = vmatpush3.bf16.msra.mxu1 %v499_v13 }
   0xa   :  { %454 = vmatpush3.bf16.msra.mxu0 %v494_v3  ;;  %473 = vmatprep.subr.bf16.mxu1 %v512_v0 }
   0xb   :  { %455 = vmatprep.subr.bf16.mxu0 %v512_v0 }
   0xe   :  { %456 = vmatpush3.bf16.msra.mxu0 %v495_v4 }
   0xf   :  { %457 = vmatprep.subr.bf16.mxu0 %v512_v0 }
  0x12   :  { %458 = vmatpush3.bf16.msra.mxu0 %v496_v7 }
  0x13   :  { %459 = vmatprep.subr.bf16.mxu0 %v512_v0 }
  0x16   :  { %460 = vmatpush3.bf16.msra.mxu0 %v81_v10  ;;  %v516_v10 = vmov -1.0  }
  0x19   :  { %462 = vmatmul.mubr.msk.bf16.vlgmr.msra.gmra.mrb[0].mxu0 %vm72_vm3, %v24_v11 }
  0xec   :  { %v117_v14 = vpop.f32.mrb[0].mxu0 }
  0xed   :  { %v123_v15 = vmax.f32 %v117_v14, 0.0  ;;  %v463_v16 = vpop.f32.mrb[1].mxu0 }
  0xee   :  { %v120_v17 = vpop.f32.mrb[2].mxu0 }
  0xef   :  { %v464_v18 = vpop.f32.mrb[3].mxu0  ;;  %v124_v19 = vpack.c.bf16 %v123_v15, %v123_v15  ;;  %v430_v17 = vld [vmem:[%s640_s5 + $0x4] ss:$0 sm:$0xff] }
  0xf1   :  { %135 = vrot.lane.b32.xlu0 %v124_v19, %s515_s0 }
 0x163   :  { %v136_v20 = vpop.permute.xlu0 %135 }
 0x164   :  { %470 = vmatmul.mubr.msk.bf16.vlgmr.msra.gmra.mrb[0].mxu1 %vm149_vm4, %v136_v20 }
 0x165   :  { %477 = vmatprep.mubr.msk.bf16.mxu1 %vm513_vm0, %v512_v0  ;;  %474 = vmatpush3.bf16.msra.mxu1 %v500_v34 }
 0x166   :  { %475 = vmatprep.subr.bf16.mxu1 %v512_v0 }
 0x169   :  { %476 = vmatpush3.bf16.msra.mxu1 %v501_v35 }
 0x16a   :  { %481 = vmatprep.subr.bf16.mxu1 %v512_v0 }
 0x237   :  { %v187_v22 = vpop.f32.mrb[0].mxu1 }
 0x238   :  { %v188_v23 = vadd.f32 %v420_v21, %v187_v22  ;;  %v471_v24 = vpop.f32.mrb[1].mxu1 }
 0x239   :  { %v190_v25 = vpop.f32.mrb[2].mxu1 }
 0x23a   :  { %v472_v26 = vpop.f32.mrb[3].mxu1  ;;  %v193_v27 = vadd.f32 %v188_v23, %v123_v15 }
 0x23c   :  { %v194_v28 = vsel %vm149_vm4, %v193_v27, 0.0 }
 0x23d   :  { %195 = vadd.xlane.f32.xlu0 %v194_v28 }
 0x2ca   :  { %v196_v29 = vpop.xlane.xlu0 %195 }
 0x2cb   :  { %v198_v30 = vmul.f32 0.03125, %v196_v29 }
 0x2cd   :  { %v199_v31 = vsub.f32 %v193_v27, %v198_v30 }
 0x2cf   :  { %v200_v32 = vmul.f32 %v199_v31, %v199_v31 }
 0x2d1   :  { %v201_v33 = vsel %vm149_vm4, %v200_v32, 0.0 }
 0x2d2   :  { %202 = vadd.xlane.f32.xlu1 %v201_v33 }
 0x35f   :  { %v203_v36 = vpop.xlane.xlu1 %202 }
 0x360   :  { %v204_v37 = vmul.f32 0.03125, %v203_v36 }
 0x362   :  { %v205_v38 = vadd.f32 1e-05, %v204_v37 }
 0x364   :  { %502 = vrsqrt.f32 %v205_v38 }
 0x36e   :  { %v503_v39 = vpop.eup %502 }
 0x36f   :  { %v207_v41 = vmul.f32 %v503_v39, %v199_v31 }
 0x371   :  { %v213_v43 = vmul.f32 %v424_v40, %v207_v41 }
 0x373   :  { %v219_v44 = vadd.f32 %v425_v42, %v213_v43 }
 0x375   :  { %v220_v45 = vpack.c.bf16 %v219_v44, %v219_v44 }
 0x377   :  { %478 = vmatmul.mubr.msk.bf16.vlgmr.msra.gmra.mrb[4].mxu1 %vm149_vm4, %v220_v45 }
 0x378   :  { %483 = vmatprep.mubr.msk.bf16.mxu1 %vm513_vm0, %v512_v0  ;;  %482 = vmatpush3.bf16.msra.mxu1 %v323_v47  ;;  %v432_v47 = vld [vmem:[%s640_s5 + $0x5] ss:$0 sm:$0xff] }
 0x44a   :  { %v279_v49 = vpop.f32.mrb[4].mxu1 }
 0x44b   :  { %v280_v50 = vadd.f32 %v426_v48, %v279_v49  ;;  %v479_v51 = vpop.f32.mrb[5].mxu1 }
 0x44c   :  { %v282_v52 = vpop.f32.mrb[6].mxu1  ;;  %v433_v51 = vld [vmem:[%s640_s5 + $0x6] ss:$0 sm:$0xff] }
 0x44d   :  { %v286_v53 = vmul.f32 0.70710677, %v280_v50  ;;  %v480_v54 = vpop.f32.mrb[7].mxu1  ;;  %v285_v13 = vmul.f32 0.5, %v280_v50 }
 0x44f   :  { %v289_v55 = vand.u32 2147483647, %v286_v53  ;;  %vm287_vm5 = vcmp.ge.f32.partialorder %v286_v53, 0.0 }
 0x450   :  { %v288_v11 = vsel %vm287_vm5, 1.0, %v516_v10 }
 0x451   :  { %v290_v56 = vmul.f32 0.3275911, %v289_v55  ;;  %v302_v58 = vsub.f32 0.0, %v289_v55 }
 0x453   :  { %v291_v57 = vadd.f32 1.0, %v290_v56  ;;  %v303_v60 = vmul.f32 %v302_v58, %v289_v55 }
 0x455   :  { %504 = vrcp.f32 %v291_v57  ;;  %v304_v63 = vmul.f32 1.442695, %v303_v60 }
 0x457   :  { %506 = vpow2.f32 %v304_v63 }
 0x45f   :  { %v505_v59 = vpop.eup %504 }
 0x460   :  { %v293_v61 = vmul.f32 1.0614054, %v505_v59 }
 0x461   :  { %v507_v7 = vpop.eup %506 }
 0x462   :  { %v294_v62 = vadd.f32 -1.4531521, %v293_v61 }
 0x464   :  { %v295_v0 = vmul.f32 %v505_v59, %v294_v62 }
 0x466   :  { %v296_v1 = vadd.f32 1.4214138, %v295_v0 }
 0x468   :  { %v297_v2 = vmul.f32 %v505_v59, %v296_v1 }
 0x46a   :  { %v298_v3 = vadd.f32 -0.28449672, %v297_v2 }
 0x46c   :  { %v299_v4 = vmul.f32 %v505_v59, %v298_v3 }
 0x46e   :  { %v300_v5 = vadd.f32 0.2548296, %v299_v4 }
 0x470   :  { %v301_v6 = vmul.f32 %v505_v59, %v300_v5 }
 0x472   :  { %v306_v8 = vmul.f32 %v507_v7, %v301_v6 }
 0x474   :  { %v307_v9 = vsub.f32 1.0, %v306_v8 }
 0x476   :  { %v308_v12 = vmul.f32 %v307_v9, %v288_v11 }
 0x478   :  { %v309_v14 = vadd.f32 1.0, %v308_v12 }
 0x47a   :  { %v310_v15 = vmul.f32 %v309_v14, %v285_v13 }
 0x47c   :  { %v311_v16 = vpack.c.bf16 %v310_v15, %v310_v15 }
 0x47e   :  { %484 = vmatmul.mubr.msk.bf16.vlgmr.msra.gmra.mrb[8].mxu1 %vm318_vm6, %v311_v16 }
 0x551   :  { %v359_v18 = vpop.f32.mrb[8].mxu1 }
 0x552   :  { %v360_v19 = vadd.f32 %v430_v17, %v359_v18  ;;  %v485_v20 = vpop.f32.mrb[9].mxu1 }
 0x553   :  { %v362_v21 = vpop.f32.mrb[10].mxu1 }
 0x554   :  { %v366_v22 = vmul.f32 0.70710677, %v360_v19  ;;  %v486_v23 = vpop.f32.mrb[11].mxu1  ;;  %v365_v45 = vmul.f32 0.5, %v360_v19 }
 0x556   :  { %v369_v24 = vand.u32 2147483647, %v366_v22  ;;  %vm367_vm7 = vcmp.ge.f32.partialorder %v366_v22, 0.0 }
 0x557   :  { %v368_v43 = vsel %vm367_vm7, 1.0, %v516_v10 }
 0x558   :  { %v370_v25 = vmul.f32 0.3275911, %v369_v24  ;;  %v382_v27 = vsub.f32 0.0, %v369_v24 }
 0x55a   :  { %v371_v26 = vadd.f32 1.0, %v370_v25  ;;  %v383_v29 = vmul.f32 %v382_v27, %v369_v24 }
 0x55c   :  { %508 = vrcp.f32 %v371_v26  ;;  %v384_v32 = vmul.f32 1.442695, %v383_v29 }
 0x55e   :  { %510 = vpow2.f32 %v384_v32 }
 0x566   :  { %v509_v28 = vpop.eup %508 }
 0x567   :  { %v373_v30 = vmul.f32 1.0614054, %v509_v28 }
 0x568   :  { %v511_v40 = vpop.eup %510 }
 0x569   :  { %v374_v31 = vadd.f32 -1.4531521, %v373_v30 }
 0x56b   :  { %v375_v33 = vmul.f32 %v509_v28, %v374_v31 }
 0x56d   :  { %v376_v34 = vadd.f32 1.4214138, %v375_v33 }
 0x56f   :  { %v377_v35 = vmul.f32 %v509_v28, %v376_v34 }
 0x571   :  { %v378_v36 = vadd.f32 -0.28449672, %v377_v35 }
 0x573   :  { %v379_v37 = vmul.f32 %v509_v28, %v378_v36 }
 0x575   :  { %v380_v38 = vadd.f32 0.2548296, %v379_v37 }
 0x577   :  { %v381_v39 = vmul.f32 %v509_v28, %v380_v38 }
 0x579   :  { %v386_v41 = vmul.f32 %v511_v40, %v381_v39 }
 0x57b   :  { %v387_v42 = vsub.f32 1.0, %v386_v41 }
 0x57d   :  { %v388_v44 = vmul.f32 %v387_v42, %v368_v43 }
 0x57f   :  { %v389_v46 = vadd.f32 1.0, %v388_v44 }
 0x581   :  { %v390_v48 = vmul.f32 %v389_v46, %v365_v45 }
 0x583   :  { %v396_v49 = vmul.f32 %v432_v47, %v390_v48 }
 0x585   :  { %v398_v50 = vsel %vm397_vm8, %v396_v49, 0.0 }
 0x586   :  { %399 = vadd.xlane.f32.xlu1 %v398_v50 }
 0x613   :  { %v400_v52 = vpop.xlane.xlu1 %399 }
 0x614   :  { %v406_v53 = vadd.f32 %v433_v51, %v400_v52 }
 0x616   :  { %408 = vst.msk [vmem:[%s643_s6] sm:$0xff] %vm407_vm9, %v406_v53 }

</bundles_post_ra>
